<compile_context>
chip_gen: v6e
topology: v6e:2x2x1
jax: 0.10.0
libtpu: 0.0.40
codegen_flags: <defaults>
</compile_context>

<pallas_src>
import jax
import jax.numpy as jnp
from jax.experimental import pallas as pl
from jax.experimental.pallas import tpu as pltpu

_LANES = 128                 # lane width (fast axis)
_SUB = 8                     # sublane multiple for row tiles
_MAX_BLOCK_ROWS = 1024       # 1024 x 128 f32 = 512 KiB per timestep slice of a block
_MAX_TIME_BLOCK = 8          # timesteps fused per grid step (x block <= 4 MiB)
_VMEM_LIMIT = 32 * 1024 * 1024


def _round_up(x, m):
    return (x + m - 1) // m * m


def _make_kernel(threshold, decay, has_mem_in, n_steps_total, time_block):
    """Build the HTGLIF kernel with threshold/decay/time_block baked in."""
    threshold = float(threshold)
    decay = float(decay)
    # For mem >= threshold >= 1e-4 the 1e-12 epsilon is below half an f32 ULP, so
    # mem/(mem+1e-12) == 1.0 exactly; the select is bit-identical to the reference.
    use_select = threshold >= 1e-4
    ragged_time = (n_steps_total % time_block) != 0

    def _run_steps(x_ref, spike_ref, mem_out_ref, tb_idx):
        mem = mem_out_ref[...]
        # Fully unrolled static inner loop over the time block: all indices are
        # compile-time constants; per-grid-step HBM traffic is TB x larger.
        for s in range(time_block):
            m = mem + x_ref[s]                       # integral
            fired = m >= threshold
            if use_select:
                spike = jnp.where(fired, 1.0, 0.0).astype(jnp.float32)
            else:
                # Fallback for tiny thresholds: literal reference formula.
                spike = jnp.where(fired, m, 0.0) / (m + 1e-12)
            spike_ref[s] = spike
            new_mem = jnp.where(fired, 0.0, m)       # reset-to-zero on fire
            if decay != 1.0:
                new_mem = new_mem * decay
            if ragged_time:
                # Ignore padded timesteps of the last (ragged) time block.
                valid = (tb_idx * time_block + s) < n_steps_total
                new_mem = jnp.where(valid, new_mem, mem)
            mem = new_mem
        # Written every grid step (cheap VMEM store); buffer is resident across
        # the time axis and flushed to HBM once per row tile.
        mem_out_ref[...] = mem

    if has_mem_in:
        def kernel(x_ref, mem_in_ref, spike_ref, mem_out_ref):
            tb_idx = pl.program_id(1)

            @pl.when(tb_idx == 0)
            def _():
                mem_out_ref[...] = mem_in_ref[...]

            _run_steps(x_ref, spike_ref, mem_out_ref, tb_idx)
    else:
        def kernel(x_ref, spike_ref, mem_out_ref):
            tb_idx = pl.program_id(1)

            @pl.when(tb_idx == 0)
            def _():
                mem_out_ref[...] = jnp.zeros_like(mem_out_ref)

            _run_steps(x_ref, spike_ref, mem_out_ref, tb_idx)

    return kernel


def htglif_forward_seq(x_seq, mem0=None, threshold=0.5, decay=1.0):
    """Run T HTGLIF timesteps in a single fused pallas_call.

    x_seq: (T, *feature_shape) float array of per-timestep inputs.
    mem0:  optional (*feature_shape) initial membrane state (None -> zeros).
    Returns (spikes (T, *feature_shape), final_mem (*feature_shape)).
    """
    x_seq = jnp.asarray(x_seq, jnp.float32)
    n_t = int(x_seq.shape[0])
    feat_shape = x_seq.shape[1:]
    feat = 1
    for d in feat_shape:
        feat *= int(d)

    # Lane padding only needs a multiple of 128 (ragged row tiles are handled by
    # cdiv grids + boundary masking); this is a no-op for typical conv activations.
    pad = (-feat) % _LANES
    padded = feat + pad
    rows = padded // _LANES

    xf = x_seq.reshape(n_t, feat)
    if pad:
        xf = jnp.pad(xf, ((0, 0), (0, pad)))
    xf = xf.reshape(n_t, rows, _LANES)

    has_mem_in = mem0 is not None
    if has_mem_in:
        memf = jnp.asarray(mem0, jnp.float32).reshape(-1)
        if pad:
            memf = jnp.pad(memf, (0, pad))
        memf = memf.reshape(rows, _LANES)

    # Row tiling: cap at _MAX_BLOCK_ROWS; otherwise split into >= 2 tiles when
    # possible (multiple of 8) so the "parallel" row axis can shard across v7x's
    # two TensorCores.  A block equal to the full row extent is always legal.
    if rows > _MAX_BLOCK_ROWS:
        block_rows = _MAX_BLOCK_ROWS
    else:
        half = _round_up((rows + 1) // 2, _SUB)
        block_rows = rows if half >= rows else half
    n_tiles = (rows + block_rows - 1) // block_rows

    # Time blocking.
    time_block = min(_MAX_TIME_BLOCK, n_t)
    n_tb = (n_t + time_block - 1) // time_block

    x_spec = pl.BlockSpec((time_block, block_rows, _LANES), lambda i, t: (t, i, 0))
    spike_spec = pl.BlockSpec((time_block, block_rows, _LANES), lambda i, t: (t, i, 0))
    mem_spec = pl.BlockSpec((block_rows, _LANES), lambda i, t: (i, 0))

    in_specs = [x_spec] + ([mem_spec] if has_mem_in else [])
    args = (xf, memf) if has_mem_in else (xf,)

    kernel = _make_kernel(threshold, decay, has_mem_in, n_t, time_block)

    spike_f, mem_f = pl.pallas_call(
        kernel,
        out_shape=(
            jax.ShapeDtypeStruct((n_t, rows, _LANES), jnp.float32),
            jax.ShapeDtypeStruct((rows, _LANES), jnp.float32),
        ),
        grid=(n_tiles, n_tb),
        in_specs=in_specs,
        out_specs=(spike_spec, mem_spec),
        compiler_params=pltpu.CompilerParams(
            dimension_semantics=("parallel", "arbitrary"),
            vmem_limit_bytes=_VMEM_LIMIT),
    )(*args)

    spike_f = spike_f.reshape(n_t, padded)
    mem_f = mem_f.reshape(padded)
    if pad:
        spike_f = spike_f[:, :feat]
        mem_f = mem_f[:feat]
    spikes = spike_f.reshape((n_t,) + feat_shape)
    new_mem = mem_f.reshape(feat_shape)
    return spikes, new_mem


def htglif_forward(x, mem=None, threshold=0.5, decay=1.0, warm_up=False):
    """One stateful HTGLIF step (like calling the nn.Module once).

    Returns (spike, new_mem); spike is the module's return value and new_mem is
    the carried membrane state for the next call.  warm_up=True bypasses the
    neuron (identity), matching the module's warm-up mode.
    """
    if warm_up:
        return jnp.asarray(x, jnp.float32), mem
    spikes, new_mem = htglif_forward_seq(x[None], mem, threshold, decay)
    return spikes[0], new_mem


def _reference_step(x, mem, threshold, decay):
    """Pure-JAX reference mirroring the PyTorch forward."""
    x = jnp.asarray(x, jnp.float32)
    if mem is None:
        mem = jnp.zeros_like(x)
    mem = mem + x
    spike = jnp.where(mem >= threshold, mem, 0.0) / (mem + 1e-12)
    new_mem = jnp.where(mem >= threshold, 0.0, mem) * decay
    return spike, new_mem


if __name__ == "__main__":
    key = jax.random.PRNGKey(0)
    T, N, C, H, W = 8, 2, 4, 16, 16
    x_seq = jax.random.normal(key, (T, N, C, H, W), dtype=jnp.float32)

    threshold, decay = 0.5, 1.0

    # --- Fused multi-timestep path (membrane state stays in VMEM across T) ---
    spikes, mem_final = htglif_forward_seq(x_seq, None, threshold, decay)
    jax.block_until_ready((spikes, mem_final))

    ref_mem = None
    ref_spikes = []
    for t in range(T):
        s, ref_mem = _reference_step(x_seq[t], ref_mem, threshold, decay)
        ref_spikes.append(s)
    ref_spikes = jnp.stack(ref_spikes)

    assert spikes.shape == (T, N, C, H, W)
    assert mem_final.shape == (N, C, H, W)
    assert jnp.allclose(spikes, ref_spikes, atol=1e-6, rtol=1e-6)
    assert jnp.allclose(mem_final, ref_mem, atol=1e-6, rtol=1e-6)

    # --- Single-step stateful path (one call per timestep, like the module) ---
    s1, m1 = htglif_forward(x_seq[0], None, threshold, decay)
    r1, rm1 = _reference_step(x_seq[0], None, threshold, decay)
    assert jnp.allclose(s1, r1, atol=1e-6, rtol=1e-6)
    assert jnp.allclose(m1, rm1, atol=1e-6, rtol=1e-6)

    s2, m2 = htglif_forward(x_seq[1], m1, threshold, decay)
    r2, rm2 = _reference_step(x_seq[1], rm1, threshold, decay)
    jax.block_until_ready((s2, m2))
    assert jnp.allclose(s2, r2, atol=1e-6, rtol=1e-6)
    assert jnp.allclose(m2, rm2, atol=1e-6, rtol=1e-6)

    # TODO(synk): the +0.2*spike - 0.2*spike.detach() straight-through term only
    # affects gradients (value-neutral forward); a custom VJP would be needed for
    # training parity.
    print("KERNEL_OK")
</pallas_src>

<mosaic_0001>
module attributes {stable_mosaic.version = 11 : i64} {
  func.func @kernel(%arg0: i32, %arg1: i32, %arg2: memref<8x8x128xf32, #tpu.memory_space<vmem>>, %arg3: memref<8x8x128xf32, #tpu.memory_space<vmem>>, %arg4: memref<8x128xf32, #tpu.memory_space<vmem>>) attributes {dimension_semantics = [#tpu.dimension_semantics<parallel>, #tpu.dimension_semantics<arbitrary>], iteration_bounds = array<i64: 2, 1>, scalar_prefetch = 0 : i64, scratch_operands = 0 : i64, tpu.core_type = #tpu.core_type<tc>, window_params = [{transform_indices = @transform_0, window_bounds = array<i64: 8, 8, 128>}, {transform_indices = @transform_1, window_bounds = array<i64: 8, 8, 128>}, {transform_indices = @transform_2, window_bounds = array<i64: 8, 128>}]} {
    %c0_i32 = arith.constant 0 : i32
    %0 = arith.cmpi eq, %arg1, %c0_i32 : i32
    %1 = arith.extui %0 : i1 to i32
    %c0_i32_0 = arith.constant 0 : i32
    %2 = arith.cmpi ne, %1, %c0_i32_0 : i32
    scf.if %2 {
      %cst_76 = arith.constant 0.000000e+00 : f32
      %109 = vector.broadcast %cst_76 : f32 to vector<8x128xf32>
      %c0_77 = arith.constant 0 : index
      %c0_78 = arith.constant 0 : index
      %110 = vector.load %arg4[%c0_77, %c0_78] : memref<8x128xf32, #tpu.memory_space<vmem>>, vector<8x128xf32>
      tpu.vector_store %arg4[%c0_77, %c0_78], %109 {strides = array<i32>} : memref<8x128xf32, #tpu.memory_space<vmem>>, vector<8x128xf32>,
    } else {
    }
    %c0 = arith.constant 0 : index
    %c0_1 = arith.constant 0 : index
    %3 = vector.load %arg4[%c0, %c0_1] : memref<8x128xf32, #tpu.memory_space<vmem>>, vector<8x128xf32>
    %c0_2 = arith.constant 0 : index
    %c0_3 = arith.constant 0 : index
    %c0_4 = arith.constant 0 : index
    %4 = vector.load %arg2[%c0_2, %c0_3, %c0_4] : memref<8x8x128xf32, #tpu.memory_space<vmem>>, vector<1x8x128xf32>
    %5 = vector.shape_cast %4 : vector<1x8x128xf32> to vector<8x128xf32>
    %6 = arith.addf %3, %5 : vector<8x128xf32>
    %cst = arith.constant 5.000000e-01 : f32
    %7 = vector.broadcast %cst : f32 to vector<8x128xf32>
    %8 = arith.cmpf oge, %6, %7 : vector<8x128xf32>
    %cst_5 = arith.constant 1.000000e+00 : f32
    %cst_6 = arith.constant 0.000000e+00 : f32
    %9 = vector.broadcast %cst_5 : f32 to vector<8x128xf32>
    %10 = vector.broadcast %cst_6 : f32 to vector<8x128xf32>
    %11 = arith.select %8, %9, %10 : vector<8x128xi1>, vector<8x128xf32>
    %c0_7 = arith.constant 0 : index
    %c0_8 = arith.constant 0 : index
    %c0_9 = arith.constant 0 : index
    %12 = vector.load %arg3[%c0_7, %c0_8, %c0_9] : memref<8x8x128xf32, #tpu.memory_space<vmem>>, vector<1x8x128xf32>
    %13 = vector.shape_cast %12 : vector<1x8x128xf32> to vector<8x128xf32>
    %14 = vector.shape_cast %11 : vector<8x128xf32> to vector<1x8x128xf32>
    tpu.vector_store %arg3[%c0_7, %c0_8, %c0_9], %14 {strides = array<i32>} : memref<8x8x128xf32, #tpu.memory_space<vmem>>, vector<1x8x128xf32>,
    %cst_10 = arith.constant 0.000000e+00 : f32
    %15 = vector.broadcast %cst_10 : f32 to vector<8x128xf32>
    %16 = arith.select %8, %15, %6 : vector<8x128xi1>, vector<8x128xf32>
    %c1 = arith.constant 1 : index
    %c0_11 = arith.constant 0 : index
    %c0_12 = arith.constant 0 : index
    %17 = vector.load %arg2[%c1, %c0_11, %c0_12] : memref<8x8x128xf32, #tpu.memory_space<vmem>>, vector<1x8x128xf32>
    %18 = vector.shape_cast %17 : vector<1x8x128xf32> to vector<8x128xf32>
    %19 = arith.addf %16, %18 : vector<8x128xf32>
    %cst_13 = arith.constant 5.000000e-01 : f32
    %20 = vector.broadcast %cst_13 : f32 to vector<8x128xf32>
    %21 = arith.cmpf oge, %19, %20 : vector<8x128xf32>
    %cst_14 = arith.constant 1.000000e+00 : f32
    %cst_15 = arith.constant 0.000000e+00 : f32
    %22 = vector.broadcast %cst_14 : f32 to vector<8x128xf32>
    %23 = vector.broadcast %cst_15 : f32 to vector<8x128xf32>
    %24 = arith.select %21, %22, %23 : vector<8x128xi1>, vector<8x128xf32>
    %c1_16 = arith.constant 1 : index
    %c0_17 = arith.constant 0 : index
    %c0_18 = arith.constant 0 : index
    %25 = vector.load %arg3[%c1_16, %c0_17, %c0_18] : memref<8x8x128xf32, #tpu.memory_space<vmem>>, vector<1x8x128xf32>
    %26 = vector.shape_cast %25 : vector<1x8x128xf32> to vector<8x128xf32>
    %27 = vector.shape_cast %24 : vector<8x128xf32> to vector<1x8x128xf32>
    tpu.vector_store %arg3[%c1_16, %c0_17, %c0_18], %27 {strides = array<i32>} : memref<8x8x128xf32, #tpu.memory_space<vmem>>, vector<1x8x128xf32>,
    %cst_19 = arith.constant 0.000000e+00 : f32
    %28 = vector.broadcast %cst_19 : f32 to vector<8x128xf32>
    %29 = arith.select %21, %28, %19 : vector<8x128xi1>, vector<8x128xf32>
    %c2 = arith.constant 2 : index
    %c0_20 = arith.constant 0 : index
    %c0_21 = arith.constant 0 : index
    %30 = vector.load %arg2[%c2, %c0_20, %c0_21] : memref<8x8x128xf32, #tpu.memory_space<vmem>>, vector<1x8x128xf32>
    %31 = vector.shape_cast %30 : vector<1x8x128xf32> to vector<8x128xf32>
    %32 = arith.addf %29, %31 : vector<8x128xf32>
    %cst_22 = arith.constant 5.000000e-01 : f32
    %33 = vector.broadcast %cst_22 : f32 to vector<8x128xf32>
    %34 = arith.cmpf oge, %32, %33 : vector<8x128xf32>
    %cst_23 = arith.constant 1.000000e+00 : f32
    %cst_24 = arith.constant 0.000000e+00 : f32
    %35 = vector.broadcast %cst_23 : f32 to vector<8x128xf32>
    %36 = vector.broadcast %cst_24 : f32 to vector<8x128xf32>
    %37 = arith.select %34, %35, %36 : vector<8x128xi1>, vector<8x128xf32>
    %c2_25 = arith.constant 2 : index
    %c0_26 = arith.constant 0 : index
    %c0_27 = arith.constant 0 : index
    %38 = vector.load %arg3[%c2_25, %c0_26, %c0_27] : memref<8x8x128xf32, #tpu.memory_space<vmem>>, vector<1x8x128xf32>
    %39 = vector.shape_cast %38 : vector<1x8x128xf32> to vector<8x128xf32>
    %40 = vector.shape_cast %37 : vector<8x128xf32> to vector<1x8x128xf32>
    tpu.vector_store %arg3[%c2_25, %c0_26, %c0_27], %40 {strides = array<i32>} : memref<8x8x128xf32, #tpu.memory_space<vmem>>, vector<1x8x128xf32>,
    %cst_28 = arith.constant 0.000000e+00 : f32
    %41 = vector.broadcast %cst_28 : f32 to vector<8x128xf32>
    %42 = arith.select %34, %41, %32 : vector<8x128xi1>, vector<8x128xf32>
    %c3 = arith.constant 3 : index
    %c0_29 = arith.constant 0 : index
    %c0_30 = arith.constant 0 : index
    %43 = vector.load %arg2[%c3, %c0_29, %c0_30] : memref<8x8x128xf32, #tpu.memory_space<vmem>>, vector<1x8x128xf32>
    %44 = vector.shape_cast %43 : vector<1x8x128xf32> to vector<8x128xf32>
    %45 = arith.addf %42, %44 : vector<8x128xf32>
    %cst_31 = arith.constant 5.000000e-01 : f32
    %46 = vector.broadcast %cst_31 : f32 to vector<8x128xf32>
    %47 = arith.cmpf oge, %45, %46 : vector<8x128xf32>
    %cst_32 = arith.constant 1.000000e+00 : f32
    %cst_33 = arith.constant 0.000000e+00 : f32
    %48 = vector.broadcast %cst_32 : f32 to vector<8x128xf32>
    %49 = vector.broadcast %cst_33 : f32 to vector<8x128xf32>
    %50 = arith.select %47, %48, %49 : vector<8x128xi1>, vector<8x128xf32>
    %c3_34 = arith.constant 3 : index
    %c0_35 = arith.constant 0 : index
    %c0_36 = arith.constant 0 : index
    %51 = vector.load %arg3[%c3_34, %c0_35, %c0_36] : memref<8x8x128xf32, #tpu.memory_space<vmem>>, vector<1x8x128xf32>
    %52 = vector.shape_cast %51 : vector<1x8x128xf32> to vector<8x128xf32>
    %53 = vector.shape_cast %50 : vector<8x128xf32> to vector<1x8x128xf32>
    tpu.vector_store %arg3[%c3_34, %c0_35, %c0_36], %53 {strides = array<i32>} : memref<8x8x128xf32, #tpu.memory_space<vmem>>, vector<1x8x128xf32>,
    %cst_37 = arith.constant 0.000000e+00 : f32
    %54 = vector.broadcast %cst_37 : f32 to vector<8x128xf32>
    %55 = arith.select %47, %54, %45 : vector<8x128xi1>, vector<8x128xf32>
    %c4 = arith.constant 4 : index
    %c0_38 = arith.constant 0 : index
    %c0_39 = arith.constant 0 : index
    %56 = vector.load %arg2[%c4, %c0_38, %c0_39] : memref<8x8x128xf32, #tpu.memory_space<vmem>>, vector<1x8x128xf32>
    %57 = vector.shape_cast %56 : vector<1x8x128xf32> to vector<8x128xf32>
    %58 = arith.addf %55, %57 : vector<8x128xf32>
    %cst_40 = arith.constant 5.000000e-01 : f32
    %59 = vector.broadcast %cst_40 : f32 to vector<8x128xf32>
    %60 = arith.cmpf oge, %58, %59 : vector<8x128xf32>
    %cst_41 = arith.constant 1.000000e+00 : f32
    %cst_42 = arith.constant 0.000000e+00 : f32
    %61 = vector.broadcast %cst_41 : f32 to vector<8x128xf32>
    %62 = vector.broadcast %cst_42 : f32 to vector<8x128xf32>
    %63 = arith.select %60, %61, %62 : vector<8x128xi1>, vector<8x128xf32>
    %c4_43 = arith.constant 4 : index
    %c0_44 = arith.constant 0 : index
    %c0_45 = arith.constant 0 : index
    %64 = vector.load %arg3[%c4_43, %c0_44, %c0_45] : memref<8x8x128xf32, #tpu.memory_space<vmem>>, vector<1x8x128xf32>
    %65 = vector.shape_cast %64 : vector<1x8x128xf32> to vector<8x128xf32>
    %66 = vector.shape_cast %63 : vector<8x128xf32> to vector<1x8x128xf32>
    tpu.vector_store %arg3[%c4_43, %c0_44, %c0_45], %66 {strides = array<i32>} : memref<8x8x128xf32, #tpu.memory_space<vmem>>, vector<1x8x128xf32>,
    %cst_46 = arith.constant 0.000000e+00 : f32
    %67 = vector.broadcast %cst_46 : f32 to vector<8x128xf32>
    %68 = arith.select %60, %67, %58 : vector<8x128xi1>, vector<8x128xf32>
    %c5 = arith.constant 5 : index
    %c0_47 = arith.constant 0 : index
    %c0_48 = arith.constant 0 : index
    %69 = vector.load %arg2[%c5, %c0_47, %c0_48] : memref<8x8x128xf32, #tpu.memory_space<vmem>>, vector<1x8x128xf32>
    %70 = vector.shape_cast %69 : vector<1x8x128xf32> to vector<8x128xf32>
    %71 = arith.addf %68, %70 : vector<8x128xf32>
    %cst_49 = arith.constant 5.000000e-01 : f32
    %72 = vector.broadcast %cst_49 : f32 to vector<8x128xf32>
    %73 = arith.cmpf oge, %71, %72 : vector<8x128xf32>
    %cst_50 = arith.constant 1.000000e+00 : f32
    %cst_51 = arith.constant 0.000000e+00 : f32
    %74 = vector.broadcast %cst_50 : f32 to vector<8x128xf32>
    %75 = vector.broadcast %cst_51 : f32 to vector<8x128xf32>
    %76 = arith.select %73, %74, %75 : vector<8x128xi1>, vector<8x128xf32>
    %c5_52 = arith.constant 5 : index
    %c0_53 = arith.constant 0 : index
    %c0_54 = arith.constant 0 : index
    %77 = vector.load %arg3[%c5_52, %c0_53, %c0_54] : memref<8x8x128xf32, #tpu.memory_space<vmem>>, vector<1x8x128xf32>
    %78 = vector.shape_cast %77 : vector<1x8x128xf32> to vector<8x128xf32>
    %79 = vector.shape_cast %76 : vector<8x128xf32> to vector<1x8x128xf32>
    tpu.vector_store %arg3[%c5_52, %c0_53, %c0_54], %79 {strides = array<i32>} : memref<8x8x128xf32, #tpu.memory_space<vmem>>, vector<1x8x128xf32>,
    %cst_55 = arith.constant 0.000000e+00 : f32
    %80 = vector.broadcast %cst_55 : f32 to vector<8x128xf32>
    %81 = arith.select %73, %80, %71 : vector<8x128xi1>, vector<8x128xf32>
    %c6 = arith.constant 6 : index
    %c0_56 = arith.constant 0 : index
    %c0_57 = arith.constant 0 : index
    %82 = vector.load %arg2[%c6, %c0_56, %c0_57] : memref<8x8x128xf32, #tpu.memory_space<vmem>>, vector<1x8x128xf32>
    %83 = vector.shape_cast %82 : vector<1x8x128xf32> to vector<8x128xf32>
    %84 = arith.addf %81, %83 : vector<8x128xf32>
    %cst_58 = arith.constant 5.000000e-01 : f32
    %85 = vector.broadcast %cst_58 : f32 to vector<8x128xf32>
    %86 = arith.cmpf oge, %84, %85 : vector<8x128xf32>
    %cst_59 = arith.constant 1.000000e+00 : f32
    %cst_60 = arith.constant 0.000000e+00 : f32
    %87 = vector.broadcast %cst_59 : f32 to vector<8x128xf32>
    %88 = vector.broadcast %cst_60 : f32 to vector<8x128xf32>
    %89 = arith.select %86, %87, %88 : vector<8x128xi1>, vector<8x128xf32>
    %c6_61 = arith.constant 6 : index
    %c0_62 = arith.constant 0 : index
    %c0_63 = arith.constant 0 : index
    %90 = vector.load %arg3[%c6_61, %c0_62, %c0_63] : memref<8x8x128xf32, #tpu.memory_space<vmem>>, vector<1x8x128xf32>
    %91 = vector.shape_cast %90 : vector<1x8x128xf32> to vector<8x128xf32>
    %92 = vector.shape_cast %89 : vector<8x128xf32> to vector<1x8x128xf32>
    tpu.vector_store %arg3[%c6_61, %c0_62, %c0_63], %92 {strides = array<i32>} : memref<8x8x128xf32, #tpu.memory_space<vmem>>, vector<1x8x128xf32>,
    %cst_64 = arith.constant 0.000000e+00 : f32
    %93 = vector.broadcast %cst_64 : f32 to vector<8x128xf32>
    %94 = arith.select %86, %93, %84 : vector<8x128xi1>, vector<8x128xf32>
    %c7 = arith.constant 7 : index
    %c0_65 = arith.constant 0 : index
    %c0_66 = arith.constant 0 : index
    %95 = vector.load %arg2[%c7, %c0_65, %c0_66] : memref<8x8x128xf32, #tpu.memory_space<vmem>>, vector<1x8x128xf32>
    %96 = vector.shape_cast %95 : vector<1x8x128xf32> to vector<8x128xf32>
    %97 = arith.addf %94, %96 : vector<8x128xf32>
    %cst_67 = arith.constant 5.000000e-01 : f32
    %98 = vector.broadcast %cst_67 : f32 to vector<8x128xf32>
    %99 = arith.cmpf oge, %97, %98 : vector<8x128xf32>
    %cst_68 = arith.constant 1.000000e+00 : f32
    %cst_69 = arith.constant 0.000000e+00 : f32
    %100 = vector.broadcast %cst_68 : f32 to vector<8x128xf32>
    %101 = vector.broadcast %cst_69 : f32 to vector<8x128xf32>
    %102 = arith.select %99, %100, %101 : vector<8x128xi1>, vector<8x128xf32>
    %c7_70 = arith.constant 7 : index
    %c0_71 = arith.constant 0 : index
    %c0_72 = arith.constant 0 : index
    %103 = vector.load %arg3[%c7_70, %c0_71, %c0_72] : memref<8x8x128xf32, #tpu.memory_space<vmem>>, vector<1x8x128xf32>
    %104 = vector.shape_cast %103 : vector<1x8x128xf32> to vector<8x128xf32>
    %105 = vector.shape_cast %102 : vector<8x128xf32> to vector<1x8x128xf32>
    tpu.vector_store %arg3[%c7_70, %c0_71, %c0_72], %105 {strides = array<i32>} : memref<8x8x128xf32, #tpu.memory_space<vmem>>, vector<1x8x128xf32>,
    %cst_73 = arith.constant 0.000000e+00 : f32
    %106 = vector.broadcast %cst_73 : f32 to vector<8x128xf32>
    %107 = arith.select %99, %106, %97 : vector<8x128xi1>, vector<8x128xf32>
    %c0_74 = arith.constant 0 : index
    %c0_75 = arith.constant 0 : index
    %108 = vector.load %arg4[%c0_74, %c0_75] : memref<8x128xf32, #tpu.memory_space<vmem>>, vector<8x128xf32>
    tpu.vector_store %arg4[%c0_74, %c0_75], %107 {strides = array<i32>} : memref<8x128xf32, #tpu.memory_space<vmem>>, vector<8x128xf32>,
    return
  }
  func.func @transform_0(%arg0: i32, %arg1: i32) -> (i32, i32, i32) {
    %c0_i32 = arith.constant 0 : i32
    %c0_i32_0 = arith.constant 0 : i32
    return %arg1, %arg0, %c0_i32 : i32, i32, i32
  }
  func.func @transform_1(%arg0: i32, %arg1: i32) -> (i32, i32, i32) {
    %c0_i32 = arith.constant 0 : i32
    %c0_i32_0 = arith.constant 0 : i32
    return %arg1, %arg0, %c0_i32 : i32, i32, i32
  }
  func.func @transform_2(%arg0: i32, %arg1: i32) -> (i32, i32) {
    %c0_i32 = arith.constant 0 : i32
    %c0_i32_0 = arith.constant 0 : i32
    return %arg0, %c0_i32 : i32, i32
  }
}

</mosaic_0001>

<bundles_post_ra>
// kernel: tpu_custom_call.1
= control target key start
LH: loop header
LB: loop body
LE: loop exit
PB: predicated region body
PF: predicated region fallthrough
CT: control target
= control target key end

     0   :  { %8 = vsyncpa [#allocation3], 0  ;;  %s876_s0 = inlined_call_operand.hbm [shape: f32[8,16,128], index: 0, kind: input, shape index: {}]   ;;  %s877_s1 = inlined_call_operand.hbm [shape: f32[8,16,128], index: 1, kind: output, shape index: {0}]   ;;  %s878_s2 = inlined_call_operand.hbm [shape: f32[16,128], index: 2, kind: output, shape index: {1}]  }
   0x1   :  { %10 = vsyncpa [#allocation3 + $0x1], 0 }
   0x2   :  { %11 = vsyncpa [#allocation4], 0 }
   0x3   :  { %13 = vsyncpa [#allocation4 + $0x1], 0 }
   0x4   :  { %14 = vsyncpa [#allocation7], 0 }
   0x5   :  { %16 = vsyncpa [#allocation7 + $0x1], 0  ;;  %s682_s9 = smov 0   ;;  %s684_s10 = smov 0  }
   0x6   :  { %s686_s11 = smov 0   ;;  %s688_s12 = smov 0  }
   0x7   :  { %s690_s13 = smov 0   ;;  %s692_s14 = smov 0  }
   0x8 LB: > { %s413_s15 = sadd.s32 4294967295, %s655_s14   ;;  %s414_s16 = sadd.s32 4294967294, %s655_s14   ;;  %s655_s14 = sphi %s692_s14, %s22_s14   ;;  %s651_s13 = sphi %s690_s13, %s889_s13   ;;  %s647_s12 = sphi %s688_s12, %s888_s12   ;;  %s643_s11 = sphi %s686_s11, %s887_s11   ;;  %s639_s10 = sphi %s684_s10, %s886_s10   ;;  %s635_s9 = sphi %s682_s9, %s885_s9  }
   0x9   : > { %s34_s17 = sadd.s32 1, %s651_s13  ;;  %s43_s18 = sadd.s32 1, %s643_s11 }
   0xa   : > { %p36_p0 = scmp.ge.s32.totalorder %s34_s17, 2  ;;  %p50_p1 = scmp.ne.s32.totalorder %s643_s11, %s639_s10 }
   0xb   : > { %p51_p2 = scmp.eq.s32.totalorder %s655_s14, 0  ;;  %p56_p3 = scmp.ne.s32.totalorder %s639_s10, %s635_s9 }
   0xc   : > { %s891_s17 = smov (%p36_p0, %s34_s17), 0  ;;  %p57_p5 = scmp.eq.s32.totalorder %s413_s15, 0 }
   0xd   : > { %p723_p4 = por %p51_p2, %p50_p1  ;;  %s39_s20 = ssub.s32 %s651_s13, %s891_s17 }
   0xe   : > { %p82_p6 = scmp.eq.s32.totalorder %s413_s15, 1  ;;  %p41_p7 = scmp.eq.s32.totalorder %s39_s20, 0 }
   0xf   : > { %p729_p8 = por %p57_p5, %p56_p3  ;;  %p88_p10 = scmp.eq.s32.totalorder %s414_s16, 1 }
  0x10   : > { %p733_p9 = por %p82_p6, %p50_p1  ;;  %p460_p13 = scmp.lt.s32.totalorder %s655_s14, 2 }
  0x11   : > { %s738_s23 = scalar_select %p41_p7, %s643_s11, %s43_s18  }
  0x12   : > { %p740_p11 = por %p88_p10, %p56_p3  ;;  %s134_s25 = sand.u32 1, %s643_s11  }
  0x13   : > { %s417_s26 = sshll.u32 %s134_s25, 6  ;;  %s418_s27 = sshll.u32 %s651_s13, 7 }
  0x14   : > { %s146_s30 = scalar_lea.hbm %s876_s0, %s418_s27  ;;  %s138_s3 = scalar_lea.vmem [#allocation2], %s417_s26 }
  0x15   : > { %s147_s4 = sshll.u32 %s138_s3, 4  ;;  %p753_p0 = pnand %p460_p13, %p723_p4  ;;  %s148_s4 = int_to_ptr.vmem [resolvable:$true] %s147_s4 }
  0x16   : > { %s135_s6 = scalar_lea.sflag [#allocation3], %s134_s25  ;;  %s530_s7 = scalar_lea.vmem %s148_s4, 1024 }
  0x17   : > { %p519_p1 = pneg %p753_p0  ;;  %p531_p2 = scmp.ne.s32.totalorder %s148_s4, %s530_s7 }
  0x18   : > { %s657_s8 = smov [#allocation2]  }
  0x19   : > { %p533_p3 = pnand %p531_p2, %p519_p1  ;;  %s535_s15 = sshll.u32 %s657_s8, 4  ;;  %s536_s15 = int_to_ptr.vmem [resolvable:$false] %s535_s15 }
  0x1a   : > { %s537_s16 = scalar_lea.vmem %s536_s15, 2048  ;;  %p538_p6 = scmp.lt.s32.totalorder %s148_s4, %s536_s15 }
  0x1b   : > { %p534_p5 = pneg %p533_p3  ;;  %p539_p7 = scmp.lt.s32.totalorder %s537_s16, %s530_s7 }
  0x1d   : > { %p540_p10 = por %p539_p7, %p538_p6 }
  0x1f   : > { %p541_p12 = pnand %p540_p10, %p534_p5 }
  0x21   : > { %544 = shalt.err (!%p541_p12)
}
  0x22   : > { %s658_s18 = smov 256   ;;  %s659_s19 = smov 128  }
  0x23   : > { %s660_s20 = smov 8   ;;  %p419_p4 = scmp.ge.s32.totalorder %s655_s14, 1 }
  0x24   : > { %452 = dma.hbm_to_vmem [thread:$0]  (!%p753_p0), %s146_s30, 1024, %s148_s4, %s135_s6, %s658_s18, %s659_s19, %s660_s20  }
  0x25   : > { %p155_p13 = scmp.lt.s32.totalorder %s655_s14, 3 }
  0x27   : > { %p156_p1 = pnand %p419_p4, %p155_p13 }
  0x28   : > { %s764_s25 = sand.u32 (!%p156_p1), 1, %s639_s10  }
  0x29   : > { %159 = sbr.rel (%p156_p1) target bundleno = 114 (0x72), region = 24  ;;  %s420_s26 = sshll.u32 (!%p156_p1), %s764_s25, 6 }
  0x2a   : > { %s162_s27 = scalar_lea.sflag (!%p156_p1), [#allocation3], %s764_s25  ;;  %s768_s28 = scalar_lea.vmem (!%p156_p1), [#allocation2], %s420_s26 }
  0x2e   : > { %622 = dma.done.wait (%p729_p8), %s162_s27, 1024  }
  0x2f   : > { %624 = vsyncadd (%p729_p8), %s162_s27, 4294966272  ;;  %v199_v0 = vld [vmem:[%s768_s28] sm:$0xff]  ;;  %v423_v1 = vld [vmem:[%s768_s28 + $0x8] sm:$0xff]  ;;  %v661_v2 = vmov 0.0   ;;  %s776_s29 = scalar_lea.vmem [#allocation5], %s420_s26  ;;  %s422_s21 = sshll.u32 %s764_s25, 3 }
  0x30   : > { %vm201_vm0 = vcmp.ge.f32.partialorder %v199_v0, 0.5  ;;  %v425_v6 = vld [vmem:[%s768_s28 + $0x10] sm:$0xff]  ;;  %v427_v10 = vld [vmem:[%s768_s28 + $0x18] sm:$0xff]  ;;  %v429_v14 = vld [vmem:[%s768_s28 + $0x20] sm:$0xff]  ;;  %s283_s30 = sshll.u32 %s776_s29, 4  ;;  %s439_s3 = sshll.u32 %s647_s12, 7  ;;  %s793_s30 = int_to_ptr.vmem [resolvable:$true] %s283_s30 }
  0x31   : > { %v202_v3 = vsel %vm201_vm0, 1.0, %v661_v2  ;;  %v204_v4 = vsel %vm201_vm0, 0.0, %v199_v0  ;;  %v431_v18 = vld [vmem:[%s768_s28 + $0x28] sm:$0xff]  ;;  %v433_v22 = vld [vmem:[%s768_s28 + $0x30] sm:$0xff]  ;;  %v435_v26 = vld [vmem:[%s768_s28 + $0x38] sm:$0xff]  ;;  %s190_s4 = scalar_lea.vmem [#allocation6], %s422_s21  ;;  %s799_s8 = scalar_lea.hbm %s877_s1, %s439_s3 }
  0x32   : > { %203 = vst [vmem:[%s776_s29] sm:$0xff] %v202_v3  ;;  %v207_v5 = vadd.f32 %v423_v1, %v204_v4  ;;  %s299_s5 = sshll.u32 %s190_s4, 4  ;;  %s804_s16 = scalar_lea.hbm %s878_s2, %s439_s3  ;;  %s806_s5 = int_to_ptr.vmem [resolvable:$true] %s299_s5 }
  0x33   : > { %s263_s18 = scalar_lea.sflag [#allocation4], %s764_s25  ;;  %s545_s19 = scalar_lea.vmem %s793_s30, 1024 }
  0x34   : > { %vm208_vm1 = vcmp.ge.f32.partialorder %v207_v5, 0.5  ;;  %p546_p8 = scmp.ne.s32.totalorder %s793_s30, %s545_s19  ;;  %s662_s20 = smov [#allocation5]  }
  0x35   : > { %v209_v7 = vsel %vm208_vm1, 1.0, %v661_v2  ;;  %v212_v8 = vsel %vm208_vm1, 0.0, %v207_v5  ;;  %s549_s26 = sshll.u32 %s662_s20, 4  ;;  %s550_s26 = int_to_ptr.vmem [resolvable:$false] %s549_s26 }
  0x36   : > { %424 = vst [vmem:[%s776_s29 + $0x8] sm:$0xff] %v209_v7  ;;  %v215_v9 = vadd.f32 %v425_v6, %v212_v8  ;;  %p547_p12 = pnand %p546_p8, %p733_p9  ;;  %s551_s27 = scalar_lea.vmem %s550_s26, 2048 }
  0x37   : > { %p552_p2 = scmp.lt.s32.totalorder %s793_s30, %s550_s26  ;;  %p553_p3 = scmp.lt.s32.totalorder %s551_s27, %s545_s19 }
  0x38   : > { %vm216_vm2 = vcmp.ge.f32.partialorder %v215_v9, 0.5  ;;  %p548_p0 = pneg %p547_p12 }
  0x39   : > { %v217_v11 = vsel %vm216_vm2, 1.0, %v661_v2  ;;  %v220_v12 = vsel %vm216_vm2, 0.0, %v215_v9  ;;  %p554_p5 = por %p553_p3, %p552_p2 }
  0x3a   : > { %426 = vst [vmem:[%s776_s29 + $0x10] sm:$0xff] %v217_v11  ;;  %v223_v13 = vadd.f32 %v427_v10, %v220_v12 }
  0x3b   : > { %p555_p6 = pnand %p554_p5, %p548_p0 }
  0x3c   : > { %vm224_vm3 = vcmp.ge.f32.partialorder %v223_v13, 0.5 }
  0x3d   : > { %v225_v15 = vsel %vm224_vm3, 1.0, %v661_v2  ;;  %v228_v16 = vsel %vm224_vm3, 0.0, %v223_v13 }
  0x3e   : > { %428 = vst [vmem:[%s776_s29 + $0x18] sm:$0xff] %v225_v15  ;;  %v231_v17 = vadd.f32 %v429_v14, %v228_v16 }
  0x40   : > { %vm232_vm4 = vcmp.ge.f32.partialorder %v231_v17, 0.5 }
  0x41   : > { %v233_v19 = vsel %vm232_vm4, 1.0, %v661_v2  ;;  %v236_v20 = vsel %vm232_vm4, 0.0, %v231_v17 }
  0x42   : > { %430 = vst [vmem:[%s776_s29 + $0x20] sm:$0xff] %v233_v19  ;;  %v239_v21 = vadd.f32 %v431_v18, %v236_v20 }
  0x44   : > { %vm240_vm5 = vcmp.ge.f32.partialorder %v239_v21, 0.5 }
  0x45   : > { %v241_v23 = vsel %vm240_vm5, 1.0, %v661_v2  ;;  %v244_v24 = vsel %vm240_vm5, 0.0, %v239_v21 }
  0x46   : > { %432 = vst [vmem:[%s776_s29 + $0x28] sm:$0xff] %v241_v23  ;;  %v247_v25 = vadd.f32 %v433_v22, %v244_v24 }
  0x48   : > { %vm248_vm6 = vcmp.ge.f32.partialorder %v247_v25, 0.5 }
  0x49   : > { %v249_v27 = vsel %vm248_vm6, 1.0, %v661_v2  ;;  %v252_v28 = vsel %vm248_vm6, 0.0, %v247_v25 }
  0x4a   : > { %434 = vst [vmem:[%s776_s29 + $0x30] sm:$0xff] %v249_v27  ;;  %v255_v29 = vadd.f32 %v435_v26, %v252_v28 }
  0x4c   : > { %vm256_vm7 = vcmp.ge.f32.partialorder %v255_v29, 0.5 }
  0x4d   : > { %v257_v30 = vsel %vm256_vm7, 1.0, %v661_v2  ;;  %v260_v31 = vsel %vm256_vm7, 0.0, %v255_v29 }
  0x4e   : > { %436 = vst [vmem:[%s776_s29 + $0x38] sm:$0xff] %v257_v30  ;;  %261 = vst [vmem:[%s190_s4] sm:$0xff] %v260_v31 }
  0x4f   : > { %558 = shalt.err (!%p555_p6)
}
  0x50   : > { %s559_s28 = scalar_lea.hbm %s799_s8, 1024  ;;  %s563_s3 = scalar_lea.hbm %s877_s1, 2048 }
  0x51   : > { %p560_p7 = scmp.ne.s32.totalorder %s799_s8, %s559_s28  ;;  %p564_p13 = scmp.lt.s32.totalorder %s799_s8, %s877_s1 }
  0x52   : > { %p565_p1 = scmp.lt.s32.totalorder %s563_s3, %s559_s28 }
  0x53   : > { %p561_p10 = pnand %p560_p7, %p733_p9 }
  0x54   : > { %p566_p8 = por %p565_p1, %p564_p13 }
  0x55   : > { %p562_p4 = pneg %p561_p10 }
  0x57   : > { %p567_p12 = pnand %p566_p8, %p562_p4 }
  0x59   : > { %570 = shalt.err (!%p567_p12)
}
  0x5a   : > { %s663_s7 = smov 128   ;;  %s664_s12 = smov 256  }
  0x5b   : > { %s665_s15 = smov 8   ;;  %s268_s19 = scalar_lea.sflag [#allocation7], %s764_s25 }
  0x5c   : > { %445 = dma.vmem_to_hbm [thread:$0]  (%p733_p9), %s793_s30, 1024, %s799_s8, %s263_s18, %s663_s7, %s664_s12, %s665_s15  }
  0x5d   : > { %s571_s20 = scalar_lea.vmem %s806_s5, 128  ;;  %s666_s26 = smov [#allocation6]  }
  0x5e   : > { %p572_p0 = scmp.ne.s32.totalorder %s806_s5, %s571_s20  ;;  %s575_s27 = sshll.u32 %s666_s26, 4  ;;  %s576_s27 = int_to_ptr.vmem [resolvable:$false] %s575_s27 }
  0x5f   : > { %s577_s28 = scalar_lea.vmem %s576_s27, 256  ;;  %p578_p5 = scmp.lt.s32.totalorder %s806_s5, %s576_s27 }
  0x60   : > { %p573_p2 = pnand %p572_p0, %p733_p9  ;;  %p579_p6 = scmp.lt.s32.totalorder %s577_s28, %s571_s20 }
  0x62   : > { %p574_p3 = pneg %p573_p2  ;;  %p580_p7 = por %p579_p6, %p578_p5 }
  0x64   : > { %p581_p10 = pnand %p580_p7, %p574_p3 }
  0x66   : > { %584 = shalt.err (!%p581_p10)
}
  0x67   : > { %s585_s30 = scalar_lea.hbm %s804_s16, 128  ;;  %s589_s18 = scalar_lea.hbm %s878_s2, 256 }
  0x68   : > { %p586_p4 = scmp.ne.s32.totalorder %s804_s16, %s585_s30  ;;  %p590_p8 = scmp.lt.s32.totalorder %s804_s16, %s878_s2 }
  0x69   : > { %p591_p12 = scmp.lt.s32.totalorder %s589_s18, %s585_s30 }
  0x6a   : > { %p587_p13 = pnand %p586_p4, %p733_p9 }
  0x6b   : > { %p592_p0 = por %p591_p12, %p590_p8 }
  0x6c   : > { %p588_p1 = pneg %p587_p13 }
  0x6e   : > { %p593_p2 = pnand %p592_p0, %p588_p1 }
  0x70   : > { %596 = shalt.err (!%p593_p2)
}
  0x71   : > { %446 = dma.vmem_to_hbm [thread:$0]  (%p733_p9), %s806_s5, 128, %s804_s16, %s268_s19  }
  0x72 PF: > { %s311_s3 = sand.u32 1, %s635_s9   ;;  %p884_p3 = scmp.ge.s32.totalorder %s655_s14, 2 }
  0x73   : > { %s312_s4 = scalar_lea.sflag [#allocation4], %s311_s3 }
  0x74   : > { %p454_p5 = pnand %p884_p3, %p740_p11 }
  0x76   : > { %p455_p6 = pneg %p454_p5 }
  0x78   : > { %626 = dma.done.wait (%p455_p6), %s312_s4, 1024  }
  0x79   : > { %628 = vsyncadd (%p455_p6), %s312_s4, 4294966272  ;;  %s321_s6 = scalar_lea.sflag [#allocation7], %s311_s3 }
  0x7a   : > { %630 = dma.done.wait (%p455_p6), %s321_s6, 128  }
  0x7b   : > { %632 = vsyncadd (%p455_p6), %s321_s6, 4294967168  ;;  %s22_s14 = sadd.s32 1, %s655_s14   ;;  %s885_s9 = smov %s639_s10 }
  0x7c   : > { %p19_p7 = scmp.ge.s32.totalorder %s22_s14, 4   ;;  %s886_s10 = smov %s643_s11 }
  0x7d   : > { %s887_s11 = smov %s738_s23  ;;  %s888_s12 = smov %s651_s13 }
  0x7e   : > { %s889_s13 = smov %s891_s17  ;;  %21 = sbr.rel (!%p19_p7) target bundleno = 8 (0x8), region = 104 }
  0x83   :  { %326 = vsyncpa [#allocation3], 1 }
  0x84   :  { %328 = vsyncpa [#allocation3 + $0x1], 1 }
  0x85   :  { %329 = vsyncpa [#allocation4], 1 }
  0x86   :  { %331 = vsyncpa [#allocation4 + $0x1], 1 }
  0x87   :  { %332 = vsyncpa [#allocation7], 1 }
  0x88   :  { %334 = vsyncpa [#allocation7 + $0x1], 1 }

</bundles_post_ra>
